<compile_context>
chip_gen: v7x
topology: tpu7x:2x2x1
jax: 0.10.0
libtpu: 0.0.40
codegen_flags: <defaults>
</compile_context>

<pallas_src>
import functools

import jax
import jax.numpy as jnp
from jax.experimental import pallas as pl
from jax.experimental.pallas import tpu as pltpu


# ---------------------------------------------------------------------------
# Fused kernel
# ---------------------------------------------------------------------------
def classifier_kernel(x_ref, slab_ref, sc_ref, o_ref, *, n_layers):
    """Fused (folded encoder) + 2-layer tanh RNN(h=1) + MLP head.

    x_ref    : (B, S, F)  VMEM  input
    slab_ref : (K, 128)   VMEM  packed weights:
                 row 0                       : w_fold = W_enc @ w_ih1      [0:F]
                 rows 1 .. 1+NL*S-1          : w_h  (layer l, row k)       [0:S]
                 rows 1+NL*S .. +NL-1        : b_h  (layer l)              [0:S]
                 rows 1+NL*S+NL .. +S-1      : w_out (row k)               [0:C]
                 row  1+NL*S+NL+S            : b_out                       [0:C]
    sc_ref   : (8,)       SMEM  [b_fold, whh1, bih1, bhh1, wih2, whh2, bih2, bhh2]
    o_ref    : (B, C)     VMEM  logits
    """
    B, S, F = x_ref.shape
    C = o_ref.shape[1]

    # Static slab row offsets.
    WFOLD = 0
    WH = 1
    BH = WH + n_layers * S
    WOUT = BH + n_layers
    BOUT = WOUT + S

    # --- folded encoder + RNN layer-1 input projection -> (B, S) ------------
    b_fold = sc_ref[0]
    wf = slab_ref[WFOLD:WFOLD + 1, 0:F]                     # (1, F)
    proj = jnp.sum(x_ref[...] * wf, axis=-1) + b_fold       # (B, S), f32 VPU/XLU

    # --- 2-layer tanh RNN, hidden_size = 1, per-timestep outputs ------------
    whh1 = sc_ref[1]
    b1 = sc_ref[2] + sc_ref[3]          # bih1 + bhh1
    wih2 = sc_ref[4]
    whh2 = sc_ref[5]
    b2 = sc_ref[6] + sc_ref[7]          # bih2 + bhh2

    # Pass 1: full h1 chain (8 dependent tanh); keep each h1[t] in vregs.
    h1 = jnp.zeros((B, 1), jnp.float32)
    h1s = []
    for t in range(S):                  # S is small & static: unroll
        h1 = jnp.tanh(proj[:, t:t + 1] + h1 * whh1 + b1)
        h1s.append(h1)
    # Dropout(0.2) between RNN layers: identity at inference.

    # Pass 2: h2 chain consumes already-materialized h1[t]; the two chains can
    # overlap on the EUP (critical depth ~9 instead of 16).
    col = jax.lax.broadcasted_iota(jnp.int32, (B, S), 1)
    h2 = jnp.zeros((B, 1), jnp.float32)
    h_flat = jnp.zeros((B, S), jnp.float32)
    for t in range(S):
        h2 = jnp.tanh(h1s[t] * wih2 + h2 * whh2 + b2)
        h_flat = jnp.where(col == t, h2, h_flat)            # vreg-resident merge

    # --- class_layers x [Linear(S,S), ReLU]: VPU broadcast-FMA, no MXU ------
    h = h_flat                          # (B, S) == Flatten((B, S, 1))
    for l in range(n_layers):
        acc = slab_ref[BH + l:BH + l + 1, 0:S]               # (1, S) bias
        base = WH + l * S
        for k in range(S):                                   # unrolled K=8 FMA
            acc = acc + h[:, k:k + 1] * slab_ref[base + k:base + k + 1, 0:S]
        h = jnp.maximum(acc, 0.0)

    # Dropout(0.5): identity at inference.

    # --- Linear(S, C): VPU broadcast-FMA ------------------------------------
    out = slab_ref[BOUT:BOUT + 1, 0:C]                       # (1, C) bias
    for k in range(S):
        out = out + h[:, k:k + 1] * slab_ref[WOUT + k:WOUT + k + 1, 0:C]
    o_ref[...] = out


# ---------------------------------------------------------------------------
# One-time parameter preparation (NOT on the per-call forward path)
# ---------------------------------------------------------------------------
def prepare_params(p, *, class_layers):
    """Fold the (linear) encoder into the RNN input projection and pack all
    weights into one lane-dense (K, 128) f32 slab + an 8-scalar SMEM vector."""
    hp = jax.lax.Precision.HIGHEST
    F, L = p["w_enc"].shape
    S = p["w_h"].shape[1]
    C = p["w_out"].shape[1]
    NL = class_layers

    # proj = x @ (W_enc @ w_ih1) + b_enc . w_ih1  (valid while encoder is linear)
    w_fold = jnp.dot(p["w_enc"], p["w_ih1"], precision=hp).astype(jnp.float32)   # (F,)
    b_fold = jnp.dot(p["b_enc"], p["w_ih1"], precision=hp).astype(jnp.float32)   # ()

    n_rows = 1 + NL * S + NL + S + 1
    K = ((n_rows + 7) // 8) * 8
    slab = jnp.zeros((K, 128), jnp.float32)
    slab = slab.at[0, 0:F].set(w_fold)
    WH = 1
    for l in range(NL):
        slab = slab.at[WH + l * S:WH + (l + 1) * S, 0:S].set(
            p["w_h"][l].astype(jnp.float32))
    BH = WH + NL * S
    slab = slab.at[BH:BH + NL, 0:S].set(p["b_h"].astype(jnp.float32))
    WOUT = BH + NL
    slab = slab.at[WOUT:WOUT + S, 0:C].set(p["w_out"].astype(jnp.float32))
    BOUT = WOUT + S
    slab = slab.at[BOUT, 0:C].set(p["b_out"].astype(jnp.float32))

    # [b_fold, whh1, bih1, bhh1, wih2, whh2, bih2, bhh2]
    sc = jnp.concatenate(
        [b_fold[None], p["rnn_scalars"].astype(jnp.float32)]).astype(jnp.float32)

    return {
        "slab": jax.block_until_ready(slab),
        "sc": jax.block_until_ready(sc),
        "n_classes": int(C),
        "class_layers": int(NL),
    }


# ---------------------------------------------------------------------------
# Forward: single pallas_call, 3 operands (x, slab, sc)
# ---------------------------------------------------------------------------
def classifier_forward(x, prepared):
    B, S, F = x.shape
    C = prepared["n_classes"]
    NL = prepared["class_layers"]
    slab = prepared["slab"]
    sc = prepared["sc"]

    vmem = pl.BlockSpec(memory_space=pltpu.MemorySpace.VMEM)
    smem = pl.BlockSpec(memory_space=pltpu.MemorySpace.SMEM)

    flops = 2 * B * S * F + 12 * B * S + NL * 2 * B * S * S + 2 * B * S * C
    bytes_accessed = 4 * (x.size + slab.size + sc.size + B * C)

    return pl.pallas_call(
        functools.partial(classifier_kernel, n_layers=NL),
        out_shape=jax.ShapeDtypeStruct((B, C), jnp.float32),
        in_specs=[vmem, vmem, smem],
        out_specs=vmem,
        cost_estimate=pl.CostEstimate(
            flops=flops, transcendentals=2 * B * S,
            bytes_accessed=bytes_accessed),
    )(x, slab, sc)


# ---------------------------------------------------------------------------
# Pure-JAX reference (original, unfolded math) for a correctness check
# ---------------------------------------------------------------------------
def reference_forward(x, p, *, class_layers):
    hp = jax.lax.Precision.HIGHEST
    B, S, F = x.shape
    L = p["w_enc"].shape[1]
    z = (jnp.dot(x.reshape(B * S, F), p["w_enc"], precision=hp)
         + p["b_enc"]).reshape(B, S, L)
    sc = p["rnn_scalars"]
    proj = jnp.sum(z * p["w_ih1"][None, None, :], axis=-1)      # (B, S)

    def step(carry, p_t):
        h1, h2 = carry
        h1n = jnp.tanh(p_t + sc[1] + h1 * sc[0] + sc[2])
        h2n = jnp.tanh(h1n * sc[3] + sc[5] + h2 * sc[4] + sc[6])
        return (h1n, h2n), h2n

    (_, _), outs = jax.lax.scan(
        step, (jnp.zeros((B,)), jnp.zeros((B,))), proj.T)
    h = outs.T                                                  # (B, S)
    for l in range(class_layers):
        h = jnp.maximum(jnp.dot(h, p["w_h"][l], precision=hp) + p["b_h"][l], 0.0)
    return jnp.dot(h, p["w_out"], precision=hp) + p["b_out"]


# ---------------------------------------------------------------------------
if __name__ == "__main__":
    B, S, F = 2, 8, 16          # batch, seq_len, input features
    L = 32                      # latent_dim
    CLASS_LAYERS = 2
    C = 4                       # n_classes

    keys = jax.random.split(jax.random.PRNGKey(0), 10)
    params = {
        "w_enc": jax.random.normal(keys[0], (F, L), jnp.float32) * 0.1,
        "b_enc": jax.random.normal(keys[1], (L,), jnp.float32) * 0.1,
        "w_ih1": jax.random.normal(keys[2], (L,), jnp.float32) * 0.1,
        # [whh1, bih1, bhh1, wih2, whh2, bih2, bhh2]
        "rnn_scalars": jax.random.normal(keys[3], (7,), jnp.float32) * 0.5,
        "w_h": jax.random.normal(keys[4], (CLASS_LAYERS, S, S), jnp.float32) * 0.3,
        "b_h": jax.random.normal(keys[5], (CLASS_LAYERS, S), jnp.float32) * 0.1,
        "w_out": jax.random.normal(keys[6], (S, C), jnp.float32) * 0.3,
        "b_out": jax.random.normal(keys[7], (C,), jnp.float32) * 0.1,
    }
    x = jax.random.normal(keys[8], (B, S, F), jnp.float32)

    prepared = prepare_params(params, class_layers=CLASS_LAYERS)   # one-time
    out = classifier_forward(x, prepared)
    out = jax.block_until_ready(out)

    ref = reference_forward(x, params, class_layers=CLASS_LAYERS)
    assert out.shape == (B, C), out.shape
    assert jnp.allclose(out, ref, atol=1e-3, rtol=1e-3), (out, ref)

    print("KERNEL_OK")
</pallas_src>

<mosaic_0001>
module attributes {stable_mosaic.version = 11 : i64} {
  func.func @classifier_kernel(%arg0: memref<2x8x16xf32, #tpu.memory_space<vmem>>, %arg1: memref<32x128xf32, #tpu.memory_space<vmem>>, %arg2: memref<8xf32, #tpu.memory_space<smem>>, %arg3: memref<2x4xf32, #tpu.memory_space<vmem>>) attributes {dimension_semantics = [], scalar_prefetch = 0 : i64, scratch_operands = 0 : i64, tpu.core_type = #tpu.core_type<tc>} {
    %c0 = arith.constant 0 : index
    %0 = memref.load %arg2[%c0] : memref<8xf32, #tpu.memory_space<smem>>
    %c0_0 = arith.constant 0 : index
    %c0_1 = arith.constant 0 : index
    %1 = vector.load %arg1[%c0_0, %c0_1] : memref<32x128xf32, #tpu.memory_space<vmem>>, vector<1x16xf32>
    %c0_2 = arith.constant 0 : index
    %c0_3 = arith.constant 0 : index
    %c0_4 = arith.constant 0 : index
    %2 = vector.load %arg0[%c0_2, %c0_3, %c0_4] : memref<2x8x16xf32, #tpu.memory_space<vmem>>, vector<2x8x16xf32>
    %3 = vector.shape_cast %1 : vector<1x16xf32> to vector<1x1x16xf32>
    %4 = vector.broadcast %3 : vector<1x1x16xf32> to vector<2x8x16xf32>
    %5 = arith.mulf %2, %4 : vector<2x8x16xf32>
    %cst = arith.constant dense<0.000000e+00> : vector<2x8xf32>
    %6 = vector.multi_reduction <add>, %5, %cst [2] : vector<2x8x16xf32> to vector<2x8xf32>
    %7 = vector.broadcast %0 : f32 to vector<2x8xf32>
    %8 = arith.addf %6, %7 : vector<2x8xf32>
    %c1 = arith.constant 1 : index
    %9 = memref.load %arg2[%c1] : memref<8xf32, #tpu.memory_space<smem>>
    %c2 = arith.constant 2 : index
    %10 = memref.load %arg2[%c2] : memref<8xf32, #tpu.memory_space<smem>>
    %c3 = arith.constant 3 : index
    %11 = memref.load %arg2[%c3] : memref<8xf32, #tpu.memory_space<smem>>
    %12 = arith.addf %10, %11 : f32
    %c4 = arith.constant 4 : index
    %13 = memref.load %arg2[%c4] : memref<8xf32, #tpu.memory_space<smem>>
    %c5 = arith.constant 5 : index
    %14 = memref.load %arg2[%c5] : memref<8xf32, #tpu.memory_space<smem>>
    %c6 = arith.constant 6 : index
    %15 = memref.load %arg2[%c6] : memref<8xf32, #tpu.memory_space<smem>>
    %c7 = arith.constant 7 : index
    %16 = memref.load %arg2[%c7] : memref<8xf32, #tpu.memory_space<smem>>
    %17 = arith.addf %15, %16 : f32
    %cst_5 = arith.constant 0.000000e+00 : f32
    %18 = vector.broadcast %cst_5 : f32 to vector<2x1xf32>
    %19 = vector.extract_strided_slice %8 {offsets = [0, 0], sizes = [2, 1], strides = [1, 1]} : vector<2x8xf32> to vector<2x1xf32>
    %20 = vector.broadcast %9 : f32 to vector<2x1xf32>
    %21 = arith.mulf %18, %20 : vector<2x1xf32>
    %22 = arith.addf %19, %21 : vector<2x1xf32>
    %23 = vector.broadcast %12 : f32 to vector<2x1xf32>
    %24 = arith.addf %22, %23 : vector<2x1xf32>
    %25 = math.tanh %24 : vector<2x1xf32>
    %26 = vector.extract_strided_slice %8 {offsets = [0, 1], sizes = [2, 1], strides = [1, 1]} : vector<2x8xf32> to vector<2x1xf32>
    %27 = vector.broadcast %9 : f32 to vector<2x1xf32>
    %28 = arith.mulf %25, %27 : vector<2x1xf32>
    %29 = arith.addf %26, %28 : vector<2x1xf32>
    %30 = vector.broadcast %12 : f32 to vector<2x1xf32>
    %31 = arith.addf %29, %30 : vector<2x1xf32>
    %32 = math.tanh %31 : vector<2x1xf32>
    %33 = vector.extract_strided_slice %8 {offsets = [0, 2], sizes = [2, 1], strides = [1, 1]} : vector<2x8xf32> to vector<2x1xf32>
    %34 = vector.broadcast %9 : f32 to vector<2x1xf32>
    %35 = arith.mulf %32, %34 : vector<2x1xf32>
    %36 = arith.addf %33, %35 : vector<2x1xf32>
    %37 = vector.broadcast %12 : f32 to vector<2x1xf32>
    %38 = arith.addf %36, %37 : vector<2x1xf32>
    %39 = math.tanh %38 : vector<2x1xf32>
    %40 = vector.extract_strided_slice %8 {offsets = [0, 3], sizes = [2, 1], strides = [1, 1]} : vector<2x8xf32> to vector<2x1xf32>
    %41 = vector.broadcast %9 : f32 to vector<2x1xf32>
    %42 = arith.mulf %39, %41 : vector<2x1xf32>
    %43 = arith.addf %40, %42 : vector<2x1xf32>
    %44 = vector.broadcast %12 : f32 to vector<2x1xf32>
    %45 = arith.addf %43, %44 : vector<2x1xf32>
    %46 = math.tanh %45 : vector<2x1xf32>
    %47 = vector.extract_strided_slice %8 {offsets = [0, 4], sizes = [2, 1], strides = [1, 1]} : vector<2x8xf32> to vector<2x1xf32>
    %48 = vector.broadcast %9 : f32 to vector<2x1xf32>
    %49 = arith.mulf %46, %48 : vector<2x1xf32>
    %50 = arith.addf %47, %49 : vector<2x1xf32>
    %51 = vector.broadcast %12 : f32 to vector<2x1xf32>
    %52 = arith.addf %50, %51 : vector<2x1xf32>
    %53 = math.tanh %52 : vector<2x1xf32>
    %54 = vector.extract_strided_slice %8 {offsets = [0, 5], sizes = [2, 1], strides = [1, 1]} : vector<2x8xf32> to vector<2x1xf32>
    %55 = vector.broadcast %9 : f32 to vector<2x1xf32>
    %56 = arith.mulf %53, %55 : vector<2x1xf32>
    %57 = arith.addf %54, %56 : vector<2x1xf32>
    %58 = vector.broadcast %12 : f32 to vector<2x1xf32>
    %59 = arith.addf %57, %58 : vector<2x1xf32>
    %60 = math.tanh %59 : vector<2x1xf32>
    %61 = vector.extract_strided_slice %8 {offsets = [0, 6], sizes = [2, 1], strides = [1, 1]} : vector<2x8xf32> to vector<2x1xf32>
    %62 = vector.broadcast %9 : f32 to vector<2x1xf32>
    %63 = arith.mulf %60, %62 : vector<2x1xf32>
    %64 = arith.addf %61, %63 : vector<2x1xf32>
    %65 = vector.broadcast %12 : f32 to vector<2x1xf32>
    %66 = arith.addf %64, %65 : vector<2x1xf32>
    %67 = math.tanh %66 : vector<2x1xf32>
    %68 = vector.extract_strided_slice %8 {offsets = [0, 7], sizes = [2, 1], strides = [1, 1]} : vector<2x8xf32> to vector<2x1xf32>
    %69 = vector.broadcast %9 : f32 to vector<2x1xf32>
    %70 = arith.mulf %67, %69 : vector<2x1xf32>
    %71 = arith.addf %68, %70 : vector<2x1xf32>
    %72 = vector.broadcast %12 : f32 to vector<2x1xf32>
    %73 = arith.addf %71, %72 : vector<2x1xf32>
    %74 = math.tanh %73 : vector<2x1xf32>
    %75 = tpu.iota {dimensions = array<i32: 1>} : vector<2x8xi32>
    %cst_6 = arith.constant 0.000000e+00 : f32
    %76 = vector.broadcast %cst_6 : f32 to vector<2x1xf32>
    %cst_7 = arith.constant 0.000000e+00 : f32
    %77 = vector.broadcast %cst_7 : f32 to vector<2x8xf32>
    %78 = vector.broadcast %13 : f32 to vector<2x1xf32>
    %79 = arith.mulf %25, %78 : vector<2x1xf32>
    %80 = vector.broadcast %14 : f32 to vector<2x1xf32>
    %81 = arith.mulf %76, %80 : vector<2x1xf32>
    %82 = arith.addf %79, %81 : vector<2x1xf32>
    %83 = vector.broadcast %17 : f32 to vector<2x1xf32>
    %84 = arith.addf %82, %83 : vector<2x1xf32>
    %85 = math.tanh %84 : vector<2x1xf32>
    %c0_i32 = arith.constant 0 : i32
    %86 = vector.broadcast %c0_i32 : i32 to vector<2x8xi32>
    %87 = arith.cmpi eq, %75, %86 : vector<2x8xi32>
    %88 = vector.shape_cast %85 : vector<2x1xf32> to vector<2x1xf32>
    %89 = vector.broadcast %88 : vector<2x1xf32> to vector<2x8xf32>
    %90 = arith.select %87, %89, %77 : vector<2x8xi1>, vector<2x8xf32>
    %91 = vector.broadcast %13 : f32 to vector<2x1xf32>
    %92 = arith.mulf %32, %91 : vector<2x1xf32>
    %93 = vector.broadcast %14 : f32 to vector<2x1xf32>
    %94 = arith.mulf %85, %93 : vector<2x1xf32>
    %95 = arith.addf %92, %94 : vector<2x1xf32>
    %96 = vector.broadcast %17 : f32 to vector<2x1xf32>
    %97 = arith.addf %95, %96 : vector<2x1xf32>
    %98 = math.tanh %97 : vector<2x1xf32>
    %c1_i32 = arith.constant 1 : i32
    %99 = vector.broadcast %c1_i32 : i32 to vector<2x8xi32>
    %100 = arith.cmpi eq, %75, %99 : vector<2x8xi32>
    %101 = vector.shape_cast %98 : vector<2x1xf32> to vector<2x1xf32>
    %102 = vector.broadcast %101 : vector<2x1xf32> to vector<2x8xf32>
    %103 = arith.select %100, %102, %90 : vector<2x8xi1>, vector<2x8xf32>
    %104 = vector.broadcast %13 : f32 to vector<2x1xf32>
    %105 = arith.mulf %39, %104 : vector<2x1xf32>
    %106 = vector.broadcast %14 : f32 to vector<2x1xf32>
    %107 = arith.mulf %98, %106 : vector<2x1xf32>
    %108 = arith.addf %105, %107 : vector<2x1xf32>
    %109 = vector.broadcast %17 : f32 to vector<2x1xf32>
    %110 = arith.addf %108, %109 : vector<2x1xf32>
    %111 = math.tanh %110 : vector<2x1xf32>
    %c2_i32 = arith.constant 2 : i32
    %112 = vector.broadcast %c2_i32 : i32 to vector<2x8xi32>
    %113 = arith.cmpi eq, %75, %112 : vector<2x8xi32>
    %114 = vector.shape_cast %111 : vector<2x1xf32> to vector<2x1xf32>
    %115 = vector.broadcast %114 : vector<2x1xf32> to vector<2x8xf32>
    %116 = arith.select %113, %115, %103 : vector<2x8xi1>, vector<2x8xf32>
    %117 = vector.broadcast %13 : f32 to vector<2x1xf32>
    %118 = arith.mulf %46, %117 : vector<2x1xf32>
    %119 = vector.broadcast %14 : f32 to vector<2x1xf32>
    %120 = arith.mulf %111, %119 : vector<2x1xf32>
    %121 = arith.addf %118, %120 : vector<2x1xf32>
    %122 = vector.broadcast %17 : f32 to vector<2x1xf32>
    %123 = arith.addf %121, %122 : vector<2x1xf32>
    %124 = math.tanh %123 : vector<2x1xf32>
    %c3_i32 = arith.constant 3 : i32
    %125 = vector.broadcast %c3_i32 : i32 to vector<2x8xi32>
    %126 = arith.cmpi eq, %75, %125 : vector<2x8xi32>
    %127 = vector.shape_cast %124 : vector<2x1xf32> to vector<2x1xf32>
    %128 = vector.broadcast %127 : vector<2x1xf32> to vector<2x8xf32>
    %129 = arith.select %126, %128, %116 : vector<2x8xi1>, vector<2x8xf32>
    %130 = vector.broadcast %13 : f32 to vector<2x1xf32>
    %131 = arith.mulf %53, %130 : vector<2x1xf32>
    %132 = vector.broadcast %14 : f32 to vector<2x1xf32>
    %133 = arith.mulf %124, %132 : vector<2x1xf32>
    %134 = arith.addf %131, %133 : vector<2x1xf32>
    %135 = vector.broadcast %17 : f32 to vector<2x1xf32>
    %136 = arith.addf %134, %135 : vector<2x1xf32>
    %137 = math.tanh %136 : vector<2x1xf32>
    %c4_i32 = arith.constant 4 : i32
    %138 = vector.broadcast %c4_i32 : i32 to vector<2x8xi32>
    %139 = arith.cmpi eq, %75, %138 : vector<2x8xi32>
    %140 = vector.shape_cast %137 : vector<2x1xf32> to vector<2x1xf32>
    %141 = vector.broadcast %140 : vector<2x1xf32> to vector<2x8xf32>
    %142 = arith.select %139, %141, %129 : vector<2x8xi1>, vector<2x8xf32>
    %143 = vector.broadcast %13 : f32 to vector<2x1xf32>
    %144 = arith.mulf %60, %143 : vector<2x1xf32>
    %145 = vector.broadcast %14 : f32 to vector<2x1xf32>
    %146 = arith.mulf %137, %145 : vector<2x1xf32>
    %147 = arith.addf %144, %146 : vector<2x1xf32>
    %148 = vector.broadcast %17 : f32 to vector<2x1xf32>
    %149 = arith.addf %147, %148 : vector<2x1xf32>
    %150 = math.tanh %149 : vector<2x1xf32>
    %c5_i32 = arith.constant 5 : i32
    %151 = vector.broadcast %c5_i32 : i32 to vector<2x8xi32>
    %152 = arith.cmpi eq, %75, %151 : vector<2x8xi32>
    %153 = vector.shape_cast %150 : vector<2x1xf32> to vector<2x1xf32>
    %154 = vector.broadcast %153 : vector<2x1xf32> to vector<2x8xf32>
    %155 = arith.select %152, %154, %142 : vector<2x8xi1>, vector<2x8xf32>
    %156 = vector.broadcast %13 : f32 to vector<2x1xf32>
    %157 = arith.mulf %67, %156 : vector<2x1xf32>
    %158 = vector.broadcast %14 : f32 to vector<2x1xf32>
    %159 = arith.mulf %150, %158 : vector<2x1xf32>
    %160 = arith.addf %157, %159 : vector<2x1xf32>
    %161 = vector.broadcast %17 : f32 to vector<2x1xf32>
    %162 = arith.addf %160, %161 : vector<2x1xf32>
    %163 = math.tanh %162 : vector<2x1xf32>
    %c6_i32 = arith.constant 6 : i32
    %164 = vector.broadcast %c6_i32 : i32 to vector<2x8xi32>
    %165 = arith.cmpi eq, %75, %164 : vector<2x8xi32>
    %166 = vector.shape_cast %163 : vector<2x1xf32> to vector<2x1xf32>
    %167 = vector.broadcast %166 : vector<2x1xf32> to vector<2x8xf32>
    %168 = arith.select %165, %167, %155 : vector<2x8xi1>, vector<2x8xf32>
    %169 = vector.broadcast %13 : f32 to vector<2x1xf32>
    %170 = arith.mulf %74, %169 : vector<2x1xf32>
    %171 = vector.broadcast %14 : f32 to vector<2x1xf32>
    %172 = arith.mulf %163, %171 : vector<2x1xf32>
    %173 = arith.addf %170, %172 : vector<2x1xf32>
    %174 = vector.broadcast %17 : f32 to vector<2x1xf32>
    %175 = arith.addf %173, %174 : vector<2x1xf32>
    %176 = math.tanh %175 : vector<2x1xf32>
    %c7_i32 = arith.constant 7 : i32
    %177 = vector.broadcast %c7_i32 : i32 to vector<2x8xi32>
    %178 = arith.cmpi eq, %75, %177 : vector<2x8xi32>
    %179 = vector.shape_cast %176 : vector<2x1xf32> to vector<2x1xf32>
    %180 = vector.broadcast %179 : vector<2x1xf32> to vector<2x8xf32>
    %181 = arith.select %178, %180, %168 : vector<2x8xi1>, vector<2x8xf32>
    %c17 = arith.constant 17 : index
    %c0_8 = arith.constant 0 : index
    %182 = vector.load %arg1[%c17, %c0_8] : memref<32x128xf32, #tpu.memory_space<vmem>>, vector<1x8xf32>
    %183 = vector.extract_strided_slice %181 {offsets = [0, 0], sizes = [2, 1], strides = [1, 1]} : vector<2x8xf32> to vector<2x1xf32>
    %c1_9 = arith.constant 1 : index
    %c0_10 = arith.constant 0 : index
    %184 = vector.load %arg1[%c1_9, %c0_10] : memref<32x128xf32, #tpu.memory_space<vmem>>, vector<1x8xf32>
    %185 = vector.broadcast %183 : vector<2x1xf32> to vector<2x8xf32>
    %186 = vector.broadcast %184 : vector<1x8xf32> to vector<2x8xf32>
    %187 = arith.mulf %185, %186 : vector<2x8xf32>
    %188 = vector.broadcast %182 : vector<1x8xf32> to vector<2x8xf32>
    %189 = arith.addf %188, %187 : vector<2x8xf32>
    %190 = vector.extract_strided_slice %181 {offsets = [0, 1], sizes = [2, 1], strides = [1, 1]} : vector<2x8xf32> to vector<2x1xf32>
    %c2_11 = arith.constant 2 : index
    %c0_12 = arith.constant 0 : index
    %191 = vector.load %arg1[%c2_11, %c0_12] : memref<32x128xf32, #tpu.memory_space<vmem>>, vector<1x8xf32>
    %192 = vector.broadcast %190 : vector<2x1xf32> to vector<2x8xf32>
    %193 = vector.broadcast %191 : vector<1x8xf32> to vector<2x8xf32>
    %194 = arith.mulf %192, %193 : vector<2x8xf32>
    %195 = arith.addf %189, %194 : vector<2x8xf32>
    %196 = vector.extract_strided_slice %181 {offsets = [0, 2], sizes = [2, 1], strides = [1, 1]} : vector<2x8xf32> to vector<2x1xf32>
    %c3_13 = arith.constant 3 : index
    %c0_14 = arith.constant 0 : index
    %197 = vector.load %arg1[%c3_13, %c0_14] : memref<32x128xf32, #tpu.memory_space<vmem>>, vector<1x8xf32>
    %198 = vector.broadcast %196 : vector<2x1xf32> to vector<2x8xf32>
    %199 = vector.broadcast %197 : vector<1x8xf32> to vector<2x8xf32>
    %200 = arith.mulf %198, %199 : vector<2x8xf32>
    %201 = arith.addf %195, %200 : vector<2x8xf32>
    %202 = vector.extract_strided_slice %181 {offsets = [0, 3], sizes = [2, 1], strides = [1, 1]} : vector<2x8xf32> to vector<2x1xf32>
    %c4_15 = arith.constant 4 : index
    %c0_16 = arith.constant 0 : index
    %203 = vector.load %arg1[%c4_15, %c0_16] : memref<32x128xf32, #tpu.memory_space<vmem>>, vector<1x8xf32>
    %204 = vector.broadcast %202 : vector<2x1xf32> to vector<2x8xf32>
    %205 = vector.broadcast %203 : vector<1x8xf32> to vector<2x8xf32>
    %206 = arith.mulf %204, %205 : vector<2x8xf32>
    %207 = arith.addf %201, %206 : vector<2x8xf32>
    %208 = vector.extract_strided_slice %181 {offsets = [0, 4], sizes = [2, 1], strides = [1, 1]} : vector<2x8xf32> to vector<2x1xf32>
    %c5_17 = arith.constant 5 : index
    %c0_18 = arith.constant 0 : index
    %209 = vector.load %arg1[%c5_17, %c0_18] : memref<32x128xf32, #tpu.memory_space<vmem>>, vector<1x8xf32>
    %210 = vector.broadcast %208 : vector<2x1xf32> to vector<2x8xf32>
    %211 = vector.broadcast %209 : vector<1x8xf32> to vector<2x8xf32>
    %212 = arith.mulf %210, %211 : vector<2x8xf32>
    %213 = arith.addf %207, %212 : vector<2x8xf32>
    %214 = vector.extract_strided_slice %181 {offsets = [0, 5], sizes = [2, 1], strides = [1, 1]} : vector<2x8xf32> to vector<2x1xf32>
    %c6_19 = arith.constant 6 : index
    %c0_20 = arith.constant 0 : index
    %215 = vector.load %arg1[%c6_19, %c0_20] : memref<32x128xf32, #tpu.memory_space<vmem>>, vector<1x8xf32>
    %216 = vector.broadcast %214 : vector<2x1xf32> to vector<2x8xf32>
    %217 = vector.broadcast %215 : vector<1x8xf32> to vector<2x8xf32>
    %218 = arith.mulf %216, %217 : vector<2x8xf32>
    %219 = arith.addf %213, %218 : vector<2x8xf32>
    %220 = vector.extract_strided_slice %181 {offsets = [0, 6], sizes = [2, 1], strides = [1, 1]} : vector<2x8xf32> to vector<2x1xf32>
    %c7_21 = arith.constant 7 : index
    %c0_22 = arith.constant 0 : index
    %221 = vector.load %arg1[%c7_21, %c0_22] : memref<32x128xf32, #tpu.memory_space<vmem>>, vector<1x8xf32>
    %222 = vector.broadcast %220 : vector<2x1xf32> to vector<2x8xf32>
    %223 = vector.broadcast %221 : vector<1x8xf32> to vector<2x8xf32>
    %224 = arith.mulf %222, %223 : vector<2x8xf32>
    %225 = arith.addf %219, %224 : vector<2x8xf32>
    %226 = vector.extract_strided_slice %181 {offsets = [0, 7], sizes = [2, 1], strides = [1, 1]} : vector<2x8xf32> to vector<2x1xf32>
    %c8 = arith.constant 8 : index
    %c0_23 = arith.constant 0 : index
    %227 = vector.load %arg1[%c8, %c0_23] : memref<32x128xf32, #tpu.memory_space<vmem>>, vector<1x8xf32>
    %228 = vector.broadcast %226 : vector<2x1xf32> to vector<2x8xf32>
    %229 = vector.broadcast %227 : vector<1x8xf32> to vector<2x8xf32>
    %230 = arith.mulf %228, %229 : vector<2x8xf32>
    %231 = arith.addf %225, %230 : vector<2x8xf32>
    %cst_24 = arith.constant 0.000000e+00 : f32
    %232 = vector.broadcast %cst_24 : f32 to vector<2x8xf32>
    %233 = arith.maximumf %231, %232 : vector<2x8xf32>
    %c18 = arith.constant 18 : index
    %c0_25 = arith.constant 0 : index
    %234 = vector.load %arg1[%c18, %c0_25] : memref<32x128xf32, #tpu.memory_space<vmem>>, vector<1x8xf32>
    %235 = vector.extract_strided_slice %233 {offsets = [0, 0], sizes = [2, 1], strides = [1, 1]} : vector<2x8xf32> to vector<2x1xf32>
    %c9 = arith.constant 9 : index
    %c0_26 = arith.constant 0 : index
    %236 = vector.load %arg1[%c9, %c0_26] : memref<32x128xf32, #tpu.memory_space<vmem>>, vector<1x8xf32>
    %237 = vector.broadcast %235 : vector<2x1xf32> to vector<2x8xf32>
    %238 = vector.broadcast %236 : vector<1x8xf32> to vector<2x8xf32>
    %239 = arith.mulf %237, %238 : vector<2x8xf32>
    %240 = vector.broadcast %234 : vector<1x8xf32> to vector<2x8xf32>
    %241 = arith.addf %240, %239 : vector<2x8xf32>
    %242 = vector.extract_strided_slice %233 {offsets = [0, 1], sizes = [2, 1], strides = [1, 1]} : vector<2x8xf32> to vector<2x1xf32>
    %c10 = arith.constant 10 : index
    %c0_27 = arith.constant 0 : index
    %243 = vector.load %arg1[%c10, %c0_27] : memref<32x128xf32, #tpu.memory_space<vmem>>, vector<1x8xf32>
    %244 = vector.broadcast %242 : vector<2x1xf32> to vector<2x8xf32>
    %245 = vector.broadcast %243 : vector<1x8xf32> to vector<2x8xf32>
    %246 = arith.mulf %244, %245 : vector<2x8xf32>
    %247 = arith.addf %241, %246 : vector<2x8xf32>
    %248 = vector.extract_strided_slice %233 {offsets = [0, 2], sizes = [2, 1], strides = [1, 1]} : vector<2x8xf32> to vector<2x1xf32>
    %c11 = arith.constant 11 : index
    %c0_28 = arith.constant 0 : index
    %249 = vector.load %arg1[%c11, %c0_28] : memref<32x128xf32, #tpu.memory_space<vmem>>, vector<1x8xf32>
    %250 = vector.broadcast %248 : vector<2x1xf32> to vector<2x8xf32>
    %251 = vector.broadcast %249 : vector<1x8xf32> to vector<2x8xf32>
    %252 = arith.mulf %250, %251 : vector<2x8xf32>
    %253 = arith.addf %247, %252 : vector<2x8xf32>
    %254 = vector.extract_strided_slice %233 {offsets = [0, 3], sizes = [2, 1], strides = [1, 1]} : vector<2x8xf32> to vector<2x1xf32>
    %c12 = arith.constant 12 : index
    %c0_29 = arith.constant 0 : index
    %255 = vector.load %arg1[%c12, %c0_29] : memref<32x128xf32, #tpu.memory_space<vmem>>, vector<1x8xf32>
    %256 = vector.broadcast %254 : vector<2x1xf32> to vector<2x8xf32>
    %257 = vector.broadcast %255 : vector<1x8xf32> to vector<2x8xf32>
    %258 = arith.mulf %256, %257 : vector<2x8xf32>
    %259 = arith.addf %253, %258 : vector<2x8xf32>
    %260 = vector.extract_strided_slice %233 {offsets = [0, 4], sizes = [2, 1], strides = [1, 1]} : vector<2x8xf32> to vector<2x1xf32>
    %c13 = arith.constant 13 : index
    %c0_30 = arith.constant 0 : index
    %261 = vector.load %arg1[%c13, %c0_30] : memref<32x128xf32, #tpu.memory_space<vmem>>, vector<1x8xf32>
    %262 = vector.broadcast %260 : vector<2x1xf32> to vector<2x8xf32>
    %263 = vector.broadcast %261 : vector<1x8xf32> to vector<2x8xf32>
    %264 = arith.mulf %262, %263 : vector<2x8xf32>
    %265 = arith.addf %259, %264 : vector<2x8xf32>
    %266 = vector.extract_strided_slice %233 {offsets = [0, 5], sizes = [2, 1], strides = [1, 1]} : vector<2x8xf32> to vector<2x1xf32>
    %c14 = arith.constant 14 : index
    %c0_31 = arith.constant 0 : index
    %267 = vector.load %arg1[%c14, %c0_31] : memref<32x128xf32, #tpu.memory_space<vmem>>, vector<1x8xf32>
    %268 = vector.broadcast %266 : vector<2x1xf32> to vector<2x8xf32>
    %269 = vector.broadcast %267 : vector<1x8xf32> to vector<2x8xf32>
    %270 = arith.mulf %268, %269 : vector<2x8xf32>
    %271 = arith.addf %265, %270 : vector<2x8xf32>
    %272 = vector.extract_strided_slice %233 {offsets = [0, 6], sizes = [2, 1], strides = [1, 1]} : vector<2x8xf32> to vector<2x1xf32>
    %c15 = arith.constant 15 : index
    %c0_32 = arith.constant 0 : index
    %273 = vector.load %arg1[%c15, %c0_32] : memref<32x128xf32, #tpu.memory_space<vmem>>, vector<1x8xf32>
    %274 = vector.broadcast %272 : vector<2x1xf32> to vector<2x8xf32>
    %275 = vector.broadcast %273 : vector<1x8xf32> to vector<2x8xf32>
    %276 = arith.mulf %274, %275 : vector<2x8xf32>
    %277 = arith.addf %271, %276 : vector<2x8xf32>
    %278 = vector.extract_strided_slice %233 {offsets = [0, 7], sizes = [2, 1], strides = [1, 1]} : vector<2x8xf32> to vector<2x1xf32>
    %c16 = arith.constant 16 : index
    %c0_33 = arith.constant 0 : index
    %279 = vector.load %arg1[%c16, %c0_33] : memref<32x128xf32, #tpu.memory_space<vmem>>, vector<1x8xf32>
    %280 = vector.broadcast %278 : vector<2x1xf32> to vector<2x8xf32>
    %281 = vector.broadcast %279 : vector<1x8xf32> to vector<2x8xf32>
    %282 = arith.mulf %280, %281 : vector<2x8xf32>
    %283 = arith.addf %277, %282 : vector<2x8xf32>
    %cst_34 = arith.constant 0.000000e+00 : f32
    %284 = vector.broadcast %cst_34 : f32 to vector<2x8xf32>
    %285 = arith.maximumf %283, %284 : vector<2x8xf32>
    %c27 = arith.constant 27 : index
    %c0_35 = arith.constant 0 : index
    %286 = vector.load %arg1[%c27, %c0_35] : memref<32x128xf32, #tpu.memory_space<vmem>>, vector<1x4xf32>
    %287 = vector.extract_strided_slice %285 {offsets = [0, 0], sizes = [2, 1], strides = [1, 1]} : vector<2x8xf32> to vector<2x1xf32>
    %c19 = arith.constant 19 : index
    %c0_36 = arith.constant 0 : index
    %288 = vector.load %arg1[%c19, %c0_36] : memref<32x128xf32, #tpu.memory_space<vmem>>, vector<1x4xf32>
    %289 = vector.broadcast %287 : vector<2x1xf32> to vector<2x4xf32>
    %290 = vector.broadcast %288 : vector<1x4xf32> to vector<2x4xf32>
    %291 = arith.mulf %289, %290 : vector<2x4xf32>
    %292 = vector.broadcast %286 : vector<1x4xf32> to vector<2x4xf32>
    %293 = arith.addf %292, %291 : vector<2x4xf32>
    %294 = vector.extract_strided_slice %285 {offsets = [0, 1], sizes = [2, 1], strides = [1, 1]} : vector<2x8xf32> to vector<2x1xf32>
    %c20 = arith.constant 20 : index
    %c0_37 = arith.constant 0 : index
    %295 = vector.load %arg1[%c20, %c0_37] : memref<32x128xf32, #tpu.memory_space<vmem>>, vector<1x4xf32>
    %296 = vector.broadcast %294 : vector<2x1xf32> to vector<2x4xf32>
    %297 = vector.broadcast %295 : vector<1x4xf32> to vector<2x4xf32>
    %298 = arith.mulf %296, %297 : vector<2x4xf32>
    %299 = arith.addf %293, %298 : vector<2x4xf32>
    %300 = vector.extract_strided_slice %285 {offsets = [0, 2], sizes = [2, 1], strides = [1, 1]} : vector<2x8xf32> to vector<2x1xf32>
    %c21 = arith.constant 21 : index
    %c0_38 = arith.constant 0 : index
    %301 = vector.load %arg1[%c21, %c0_38] : memref<32x128xf32, #tpu.memory_space<vmem>>, vector<1x4xf32>
    %302 = vector.broadcast %300 : vector<2x1xf32> to vector<2x4xf32>
    %303 = vector.broadcast %301 : vector<1x4xf32> to vector<2x4xf32>
    %304 = arith.mulf %302, %303 : vector<2x4xf32>
    %305 = arith.addf %299, %304 : vector<2x4xf32>
    %306 = vector.extract_strided_slice %285 {offsets = [0, 3], sizes = [2, 1], strides = [1, 1]} : vector<2x8xf32> to vector<2x1xf32>
    %c22 = arith.constant 22 : index
    %c0_39 = arith.constant 0 : index
    %307 = vector.load %arg1[%c22, %c0_39] : memref<32x128xf32, #tpu.memory_space<vmem>>, vector<1x4xf32>
    %308 = vector.broadcast %306 : vector<2x1xf32> to vector<2x4xf32>
    %309 = vector.broadcast %307 : vector<1x4xf32> to vector<2x4xf32>
    %310 = arith.mulf %308, %309 : vector<2x4xf32>
    %311 = arith.addf %305, %310 : vector<2x4xf32>
    %312 = vector.extract_strided_slice %285 {offsets = [0, 4], sizes = [2, 1], strides = [1, 1]} : vector<2x8xf32> to vector<2x1xf32>
    %c23 = arith.constant 23 : index
    %c0_40 = arith.constant 0 : index
    %313 = vector.load %arg1[%c23, %c0_40] : memref<32x128xf32, #tpu.memory_space<vmem>>, vector<1x4xf32>
    %314 = vector.broadcast %312 : vector<2x1xf32> to vector<2x4xf32>
    %315 = vector.broadcast %313 : vector<1x4xf32> to vector<2x4xf32>
    %316 = arith.mulf %314, %315 : vector<2x4xf32>
    %317 = arith.addf %311, %316 : vector<2x4xf32>
    %318 = vector.extract_strided_slice %285 {offsets = [0, 5], sizes = [2, 1], strides = [1, 1]} : vector<2x8xf32> to vector<2x1xf32>
    %c24 = arith.constant 24 : index
    %c0_41 = arith.constant 0 : index
    %319 = vector.load %arg1[%c24, %c0_41] : memref<32x128xf32, #tpu.memory_space<vmem>>, vector<1x4xf32>
    %320 = vector.broadcast %318 : vector<2x1xf32> to vector<2x4xf32>
    %321 = vector.broadcast %319 : vector<1x4xf32> to vector<2x4xf32>
    %322 = arith.mulf %320, %321 : vector<2x4xf32>
    %323 = arith.addf %317, %322 : vector<2x4xf32>
    %324 = vector.extract_strided_slice %285 {offsets = [0, 6], sizes = [2, 1], strides = [1, 1]} : vector<2x8xf32> to vector<2x1xf32>
    %c25 = arith.constant 25 : index
    %c0_42 = arith.constant 0 : index
    %325 = vector.load %arg1[%c25, %c0_42] : memref<32x128xf32, #tpu.memory_space<vmem>>, vector<1x4xf32>
    %326 = vector.broadcast %324 : vector<2x1xf32> to vector<2x4xf32>
    %327 = vector.broadcast %325 : vector<1x4xf32> to vector<2x4xf32>
    %328 = arith.mulf %326, %327 : vector<2x4xf32>
    %329 = arith.addf %323, %328 : vector<2x4xf32>
    %330 = vector.extract_strided_slice %285 {offsets = [0, 7], sizes = [2, 1], strides = [1, 1]} : vector<2x8xf32> to vector<2x1xf32>
    %c26 = arith.constant 26 : index
    %c0_43 = arith.constant 0 : index
    %331 = vector.load %arg1[%c26, %c0_43] : memref<32x128xf32, #tpu.memory_space<vmem>>, vector<1x4xf32>
    %332 = vector.broadcast %330 : vector<2x1xf32> to vector<2x4xf32>
    %333 = vector.broadcast %331 : vector<1x4xf32> to vector<2x4xf32>
    %334 = arith.mulf %332, %333 : vector<2x4xf32>
    %335 = arith.addf %329, %334 : vector<2x4xf32>
    %c0_44 = arith.constant 0 : index
    %c0_45 = arith.constant 0 : index
    %336 = vector.load %arg3[%c0_44, %c0_45] : memref<2x4xf32, #tpu.memory_space<vmem>>, vector<2x4xf32>
    tpu.vector_store %arg3[%c0_44, %c0_45], %335 {strides = array<i32>} : memref<2x4xf32, #tpu.memory_space<vmem>>, vector<2x4xf32>,
    return
  }
}

</mosaic_0001>

<bundles_post_ra>
// kernel: tpu_custom_call.1
= control target key start
LH: loop header
LB: loop body
LE: loop exit
PB: predicated region body
PF: predicated region fallthrough
CT: control target
= control target key end

     0   :  { %8 = vsyncpa [#allocation3], 0  ;;  %s1237_s0 = inlined_call_operand.hbm [shape: f32[2,8,16], index: 0, kind: input, shape index: {}]   ;;  %s1238_s1 = inlined_call_operand.hbm [shape: f32[32,128], index: 1, kind: input, shape index: {}]   ;;  %s1239_s2 = inlined_call_operand.vmem [shape: f32[8], index: 2, kind: input, shape index: {}]   ;;  %s1240_s3 = inlined_call_operand.hbm [shape: f32[2,4], index: 3, kind: output, shape index: {}]  }
   0x1   :  { %9 = vsyncpa [#allocation7], 0 }
   0x2   :  { %10 = vsyncpa [#allocation5], 0 }
   0x3   :  { %11 = vsyncpa [#allocation4], 0  ;;  %s1000_s12 = smov [#allocation2]   ;;  %s914_s16 = scalar_lea.hbm %s1237_s0, 256 }
   0x4   :  { %s17_s13 = sshll.u32 %s1000_s12, 4  ;;  %p915_p0 = scmp.ne.s32.totalorder %s1237_s0, %s914_s16  ;;  %s18_s13 = int_to_ptr.vmem [resolvable:$true] %s17_s13 }
   0x5   :  { %p918_p1 = scmp.lt.u32.totalorder %s914_s16, %s1237_s0 }
   0x7   :  { %p920_p2 = pnand %p918_p1, %p915_p0 }
   0x9   :  { %923 = shalt.err (!%p920_p2)
}
   0xa   :  { %s924_s21 = scalar_lea.vmem %s18_s13, 256  ;;  %p929_p4 = scmp.lt.s32.totalorder %s18_s13, %s18_s13 }
   0xb   :  { %p925_p3 = scmp.ne.s32.totalorder %s18_s13, %s924_s21  ;;  %p930_p5 = scmp.lt.s32.totalorder %s924_s21, %s924_s21 }
   0xd   :  { %p931_p6 = por %p930_p5, %p929_p4 }
   0xf   :  { %p932_p7 = pnand %p931_p6, %p925_p3 }
  0x11   :  { %935 = shalt.err (!%p932_p7)
}
  0x12   :  { %s1001_s22 = smov 128   ;;  %s1002_s23 = smov 8  }
  0x13   :  { %23 = dma.hbm_to_vmem [thread:$0]  %s1237_s0, 256, %s18_s13, [#allocation3], %s1001_s22, %s1001_s22, %s1002_s23  }
  0x14   :  { %s1003_s26 = smov [#allocation6]   ;;  %s42_s30 = sshll.u32 %s1239_s2, 4  ;;  %s43_s30 = int_to_ptr.vmem [resolvable:$true] %s42_s30 }
  0x15   :  { %s29_s27 = sshll.u32 %s1003_s26, 4  ;;  %s936_s6 = scalar_lea.hbm %s1238_s1, 512  ;;  %s30_s27 = int_to_ptr.vmem [resolvable:$true] %s29_s27 }
  0x16   :  { %p937_p8 = scmp.ne.s32.totalorder %s1238_s1, %s936_s6  ;;  %p940_p9 = scmp.lt.u32.totalorder %s936_s6, %s1238_s1 }
  0x18   :  { %p942_p10 = pnand %p940_p9, %p937_p8 }
  0x1a   :  { %945 = shalt.err (!%p942_p10)
}
  0x1b   :  { %s946_s0 = scalar_lea.vmem %s30_s27, 512  ;;  %p951_p12 = scmp.lt.s32.totalorder %s30_s27, %s30_s27 }
  0x1c   :  { %p947_p11 = scmp.ne.s32.totalorder %s30_s27, %s946_s0  ;;  %p952_p13 = scmp.lt.s32.totalorder %s946_s0, %s946_s0 }
  0x1e   :  { %p953_p0 = por %p952_p13, %p951_p12 }
  0x20   :  { %p954_p1 = pnand %p953_p0, %p947_p11 }
  0x22   :  { %957 = shalt.err (!%p954_p1)
}
  0x23   :  { %35 = dma.hbm_to_vmem [thread:$0]  %s1238_s1, 512, %s30_s27, [#allocation7], %s1001_s22, %s1001_s22, %s1002_s23  }
  0x24   :  { %s958_s12 = scalar_lea.vmem %s43_s30, 16  ;;  %p963_p3 = scmp.lt.s32.totalorder %s43_s30, %s43_s30 }
  0x25   :  { %p959_p2 = scmp.ne.s32.totalorder %s43_s30, %s958_s12  ;;  %p964_p4 = scmp.lt.s32.totalorder %s958_s12, %s958_s12 }
  0x27   :  { %p965_p5 = por %p964_p4, %p963_p3 }
  0x29   :  { %p966_p6 = pnand %p965_p5, %p959_p2 }
  0x2b   :  { %969 = shalt.err (!%p966_p6)
}
  0x2c   :  { %s1004_s13 = smov [#allocation8]  }
  0x2d   :  { %45 = dma.vmem_to_smem %s43_s30, 16, %s1004_s13, [#allocation5]  }
  0x2e   :  { %992 = dma.done.wait [#allocation3], 256  }
  0x2f   :  { %993 = vsyncadd [#allocation3], 4294967040 }
  0x30   :  { %994 = dma.done.wait [#allocation7], 512  }
  0x31   :  { %995 = vsyncadd [#allocation7], 4294966784 }
  0x32   :  { %996 = dma.done.wait [#allocation5], 16  }
  0x33   :  { %997 = vsyncadd [#allocation5], 4294967280 }
  0x34   :  { %55 = sfence }
  0x35   :  { %v776_v0 = vld [vmem:[#allocation6] ss:$0 sm:$0xff]  ;;  %v58_v1 = vld [vmem:[#allocation2] sm:$0xff]  ;;  %vm66_vm0 = vcmask 130048   ;;  %v59_v2 = vld [vmem:[#allocation2 + $0x8] sm:$0xff]  ;;  %v1005_v7 = vmov 0   ;;  %v192_v39 = vlaneseq }
  0x36   :  { %v64_v3 = vmul.f32 %v776_v0, %v58_v1  ;;  %v65_v4 = vmul.f32 %v776_v0, %v59_v2  ;;  %825 = vset.pattern.permute.xlu1 %v1005_v7  ;;  %826 = vset.pattern.permute.xlu0 %v1005_v7  ;;  %s777_s1 = sld [smem:[#allocation8 + $0x1]]  ;;  %s778_s14 = sld [smem:[#allocation8 + $0x2]]  ;;  %vm217_vm1 = vcmask 1041409   ;;  %vm757_vm10 = vcmask 25600  }
  0x37   :  { %s779_s15 = sld [smem:[#allocation8 + $0x3]]  ;;  %s56_s16 = sld [smem:[#allocation8]]  ;;  %v1093_v41 = vshrl.u32 %v192_v39, 7  ;;  %v1096_v45 = vand.u32 127, %v192_v39 }
  0x38   :  { %v67_v5 = vsel %vm66_vm0, %v64_v3, 0.0  ;;  %v70_v6 = vsel %vm66_vm0, %v65_v4, 0.0  ;;  %s781_s18 = sld [smem:[#allocation8 + $0x5]]  ;;  %s780_s19 = sld [smem:[#allocation8 + $0x4]] }
  0x39   :  { %68 = vadd.xlane.f32.xlu0 %v67_v5  ;;  %s782_s20 = sld [smem:[#allocation8 + $0x6]]  ;;  %s783_s21 = sld [smem:[#allocation8 + $0x7]]  ;;  %v209_v46 = vsub.s32 0, %v1093_v41  ;;  %vm206_vm2 = vcmp.eq.s32.totalorder %v1096_v45, 0  ;;  %v276_v39 = vsub.s32 2, %v1093_v41  ;;  %vm237_vm3 = vcmp.eq.s32.totalorder %v1096_v45, 1 }
  0x3a   :  { %vm273_vm4 = vcmp.eq.s32.totalorder %v1096_v45, 2  ;;  %vm309_vm5 = vcmp.eq.s32.totalorder %v1096_v45, 3  ;;  %vm345_vm6 = vcmp.eq.s32.totalorder %v1096_v45, 4  ;;  %vm381_vm7 = vcmp.eq.s32.totalorder %v1096_v45, 5  ;;  %s1013_s23 = smov [#allocation9]  }
  0x3b   :  { %vm417_vm8 = vcmp.eq.s32.totalorder %v1096_v45, 6  ;;  %vm453_vm9 = vcmp.eq.s32.totalorder %v1096_v45, 7  ;;  %v1011_v45 = vmov 6   ;;  %s765_s24 = sshll.u32 %s1013_s23, 4  ;;  %s766_s24 = int_to_ptr.vmem [resolvable:$true] %s765_s24 }
  0x3c   :  { %v1063_v8 = vstv %s777_s1  ;;  %s970_s25 = scalar_lea.vmem %s766_s24, 32  ;;  %p975_p8 = scmp.lt.s32.totalorder %s766_s24, %s766_s24 }
  0x3d   :  { %71 = vadd.xlane.f32.xlu0 %v70_v6  ;;  %s79_s17 = sadd.f32 %s779_s15, %s778_s14  ;;  %v73_v9 = vstv %s56_s16  ;;  %v86_v10 = vmul.f32 0.0, %v1063_v8  ;;  %v240_v6 = vsub.s32 1, %v1093_v41  ;;  %p971_p7 = scmp.ne.s32.totalorder %s766_s24, %s970_s25 }
  0x3e   :  { %v1076_v20 = vstv %s781_s18  ;;  %v1078_v21 = vstv %s780_s19  ;;  %p976_p9 = scmp.lt.s32.totalorder %s970_s25, %s970_s25 }
  0x3f   :  { %v1068_v13 = vstv %s79_s17  ;;  %s84_s22 = sadd.f32 %s783_s21, %s782_s20  ;;  %v198_v22 = vmul.f32 0.0, %v1076_v20 }
  0x40   :  { %p977_p10 = por %p976_p9, %p975_p8 }
  0x41   :  { %v1083_v26 = vstv %s84_s22 }
  0x42   :  { %p978_p11 = pnand %p977_p10, %p971_p7 }
  0xc6   :  { %v69_v11 = vpop.xlane.xlu0 %68 }
  0xc7   :  { %v1066_v12 = vadd.f32 %v73_v9, %v69_v11 }
  0xc9   :  { %v87_v14 = vadd.f32 %v86_v10, %v1066_v12 }
  0xca   :  { %v72_v15 = vpop.xlane.xlu0 %71 }
  0xcb   :  { %v90_v16 = vadd.f32 %v1068_v13, %v87_v14  ;;  %v1072_v17 = vadd.f32 %v73_v9, %v72_v15 }
  0xcd   :  { %850 = vtanh.f32 %v90_v16  ;;  %v88_v18 = vadd.f32 %v86_v10, %v1072_v17 }
  0xcf   :  { %v91_v19 = vadd.f32 %v1068_v13, %v88_v18 }
  0xd1   :  { %852 = vtanh.f32 %v91_v19 }
  0xd7   :  { %v851_v23 = vpop.eup %850 }
  0xd8   :  { %v94_v24 = vmul.f32 %v851_v23, %v1063_v8  ;;  %v195_v25 = vmul.f32 %v851_v23, %v1078_v21 }
  0xda   :  { %v98_v27 = vrot.slane %v94_v24, 7  ;;  %v199_v28 = vadd.f32 %v198_v22, %v195_v25 }
  0xdb   :  { %v853_v29 = vpop.eup %852 }
  0xdc   :  { %v95_v30 = vmul.f32 %v853_v29, %v1063_v8  ;;  %v102_v31 = vadd.f32 %v98_v27, %v1066_v12  ;;  %v202_v32 = vadd.f32 %v1083_v26, %v199_v28  ;;  %v196_v33 = vmul.f32 %v853_v29, %v1078_v21 }
  0xde   :  { %v99_v34 = vrot.slane %v95_v30, 7  ;;  %v104_v35 = vadd.f32 %v102_v31, %v1068_v13  ;;  %854 = vtanh.f32 %v202_v32  ;;  %v200_v36 = vadd.f32 %v198_v22, %v196_v33 }
  0xe0   :  { %v103_v37 = vadd.f32 %v99_v34, %v1072_v17  ;;  %856 = vtanh.f32 %v104_v35  ;;  %v203_v38 = vadd.f32 %v1083_v26, %v200_v36 }
  0xe2   :  { %v105_v40 = vadd.f32 %v103_v37, %v1068_v13  ;;  %858 = vtanh.f32 %v203_v38 }
  0xe4   :  { %860 = vtanh.f32 %v105_v40 }
  0xe8   :  { %v855_v42 = vpop.eup %854 }
  0xe9   :  { %v223_v43 = vmul.f32 %v855_v42, %v1076_v20  ;;  %v210_v56 = vrot.slane %v855_v42, %v209_v46 }
  0xea   :  { %v857_v44 = vpop.eup %856 }
  0xeb   :  { %v221_v47 = vmul.f32 %v857_v44, %v1078_v21  ;;  %v227_v48 = vrot.slane %v223_v43, 7  ;;  %v108_v49 = vmul.f32 %v857_v44, %v1063_v8 }
  0xec   :  { %v859_v50 = vpop.eup %858 }
  0xed   :  { %v231_v51 = vadd.f32 %v227_v48, %v221_v47  ;;  %v224_v52 = vmul.f32 %v859_v50, %v1076_v20  ;;  %v112_v53 = vrot.slane %v108_v49, 7  ;;  %v214_v54 = vrot.slane %v859_v50, %v209_v46 }
  0xee   :  { %v861_v55 = vpop.eup %860 }
  0xef   :  { %v233_v57 = vadd.f32 %v231_v51, %v1083_v26  ;;  %v222_v58 = vmul.f32 %v861_v55, %v1078_v21  ;;  %v228_v59 = vrot.slane %v224_v52, 7  ;;  %v116_v60 = vadd.f32 %v112_v53, %v1066_v12 }
  0xf0   :  { %v109_v61 = vmul.f32 %v861_v55, %v1063_v8  ;;  %v218_v62 = vsel %vm217_vm1, %v214_v54, %v210_v56 }
  0xf1   :  { %862 = vtanh.f32 %v233_v57  ;;  %v232_v63 = vadd.f32 %v228_v59, %v222_v58  ;;  %v118_v0 = vadd.f32 %v116_v60, %v1068_v13  ;;  %v1109_v1 = vsel %vm206_vm2, %v218_v62, 0.0 }
  0xf2   :  { %v113_v2 = vrot.slane %v109_v61, 7 }
  0xf3   :  { %v234_v3 = vadd.f32 %v232_v63, %v1083_v26  ;;  %864 = vtanh.f32 %v118_v0 }
  0xf4   :  { %v117_v4 = vadd.f32 %v113_v2, %v1072_v17 }
  0xf5   :  { %866 = vtanh.f32 %v234_v3  ;;  %v312_v3 = vsub.s32 3, %v1093_v41 }
  0xf6   :  { %v119_v5 = vadd.f32 %v117_v4, %v1068_v13 }
  0xf8   :  { %868 = vtanh.f32 %v119_v5 }
  0xfb   :  { %v863_v9 = vpop.eup %862 }
  0xfc   :  { %v241_v10 = vrot.slane %v863_v9, %v240_v6  ;;  %v259_v11 = vmul.f32 %v863_v9, %v1076_v20 }
  0xfd   :  { %v865_v14 = vpop.eup %864 }
  0xfe   :  { %249 = vperm.xlu1 %825, %v241_v10   ;;  %v257_v15 = vmul.f32 %v865_v14, %v1078_v21  ;;  %v263_v16 = vrot.slane %v259_v11, 7  ;;  %v122_v18 = vmul.f32 %v865_v14, %v1063_v8 }
  0xff   :  { %v867_v19 = vpop.eup %866 }
 0x100   :  { %v245_v22 = vrot.slane %v867_v19, %v240_v6  ;;  %v267_v23 = vadd.f32 %v263_v16, %v257_v15  ;;  %v260_v24 = vmul.f32 %v867_v19, %v1076_v20  ;;  %v126_v25 = vrot.slane %v122_v18, 7 }
 0x102   :  { %v869_v27 = vpop.eup %868  ;;  %252 = vperm.xlu1 %825, %v245_v22   ;;  %v269_v28 = vadd.f32 %v267_v23, %v1083_v26  ;;  %v264_v29 = vrot.slane %v260_v24, 7  ;;  %v130_v30 = vadd.f32 %v126_v25, %v1066_v12 }
 0x103   :  { %v258_v31 = vmul.f32 %v869_v27, %v1078_v21  ;;  %v123_v32 = vmul.f32 %v869_v27, %v1063_v8 }
 0x104   :  { %870 = vtanh.f32 %v269_v28  ;;  %v132_v33 = vadd.f32 %v130_v30, %v1068_v13 }
 0x105   :  { %v268_v34 = vadd.f32 %v264_v29, %v258_v31  ;;  %v127_v35 = vrot.slane %v123_v32, 7 }
 0x106   :  { %872 = vtanh.f32 %v132_v33 }
 0x107   :  { %v270_v36 = vadd.f32 %v268_v34, %v1083_v26  ;;  %v131_v37 = vadd.f32 %v127_v35, %v1072_v17 }
 0x109   :  { %874 = vtanh.f32 %v270_v36  ;;  %v133_v38 = vadd.f32 %v131_v37, %v1068_v13  ;;  %v348_v36 = vsub.s32 4, %v1093_v41 }
 0x10b   :  { %876 = vtanh.f32 %v133_v38 }
 0x10e   :  { %v871_v40 = vpop.eup %870 }
 0x10f   :  { %v277_v42 = vrot.slane %v871_v40, %v276_v39  ;;  %v295_v43 = vmul.f32 %v871_v40, %v1076_v20 }
 0x110   :  { %v873_v44 = vpop.eup %872 }
 0x111   :  { %285 = vperm.xlu0 %826, %v277_v42   ;;  %v293_v46 = vmul.f32 %v873_v44, %v1078_v21  ;;  %v299_v47 = vrot.slane %v295_v43, 7  ;;  %v136_v48 = vmul.f32 %v873_v44, %v1063_v8 }
 0x113   :  { %v875_v49 = vpop.eup %874  ;;  %v303_v50 = vadd.f32 %v299_v47, %v293_v46  ;;  %v140_v51 = vrot.slane %v136_v48, 7 }
 0x114   :  { %v281_v52 = vrot.slane %v875_v49, %v276_v39  ;;  %v296_v53 = vmul.f32 %v875_v49, %v1076_v20 }
 0x115   :  { %v877_v54 = vpop.eup %876  ;;  %v305_v55 = vadd.f32 %v303_v50, %v1083_v26  ;;  %v144_v56 = vadd.f32 %v140_v51, %v1066_v12 }
 0x116   :  { %288 = vperm.xlu1 %825, %v281_v52   ;;  %v294_v57 = vmul.f32 %v877_v54, %v1078_v21  ;;  %v300_v58 = vrot.slane %v296_v53, 7  ;;  %v137_v59 = vmul.f32 %v877_v54, %v1063_v8 }
 0x117   :  { %878 = vtanh.f32 %v305_v55  ;;  %v146_v60 = vadd.f32 %v144_v56, %v1068_v13 }
 0x118   :  { %v304_v61 = vadd.f32 %v300_v58, %v294_v57  ;;  %v141_v62 = vrot.slane %v137_v59, 7 }
 0x119   :  { %880 = vtanh.f32 %v146_v60 }
 0x11a   :  { %v306_v63 = vadd.f32 %v304_v61, %v1083_v26  ;;  %v145_v0 = vadd.f32 %v141_v62, %v1072_v17 }
 0x11c   :  { %882 = vtanh.f32 %v306_v63  ;;  %v147_v2 = vadd.f32 %v145_v0, %v1068_v13  ;;  %v384_v63 = vsub.s32 5, %v1093_v41 }
 0x11e   :  { %884 = vtanh.f32 %v147_v2 }
 0x121   :  { %v879_v4 = vpop.eup %878 }
 0x122   :  { %v313_v5 = vrot.slane %v879_v4, %v312_v3  ;;  %v331_v6 = vmul.f32 %v879_v4, %v1076_v20 }
 0x123   :  { %v881_v9 = vpop.eup %880 }
 0x124   :  { %321 = vperm.xlu1 %825, %v313_v5   ;;  %v329_v10 = vmul.f32 %v881_v9, %v1078_v21  ;;  %v335_v11 = vrot.slane %v331_v6, 7  ;;  %v150_v14 = vmul.f32 %v881_v9, %v1063_v8 }
 0x126   :  { %v883_v15 = vpop.eup %882  ;;  %v339_v16 = vadd.f32 %v335_v11, %v329_v10  ;;  %v154_v18 = vrot.slane %v150_v14, 7 }
 0x127   :  { %v317_v19 = vrot.slane %v883_v15, %v312_v3  ;;  %v332_v22 = vmul.f32 %v883_v15, %v1076_v20 }
 0x128   :  { %v885_v23 = vpop.eup %884  ;;  %v341_v24 = vadd.f32 %v339_v16, %v1083_v26  ;;  %v158_v25 = vadd.f32 %v154_v18, %v1066_v12 }
 0x129   :  { %324 = vperm.xlu1 %825, %v317_v19   ;;  %v330_v27 = vmul.f32 %v885_v23, %v1078_v21  ;;  %v336_v28 = vrot.slane %v332_v22, 7  ;;  %v151_v29 = vmul.f32 %v885_v23, %v1063_v8 }
 0x12a   :  { %886 = vtanh.f32 %v341_v24  ;;  %v160_v30 = vadd.f32 %v158_v25, %v1068_v13 }
 0x12b   :  { %v340_v31 = vadd.f32 %v336_v28, %v330_v27  ;;  %v155_v32 = vrot.slane %v151_v29, 7 }
 0x12c   :  { %888 = vtanh.f32 %v160_v30 }
 0x12d   :  { %v342_v33 = vadd.f32 %v340_v31, %v1083_v26  ;;  %v159_v34 = vadd.f32 %v155_v32, %v1072_v17 }
 0x12f   :  { %890 = vtanh.f32 %v342_v33  ;;  %v161_v35 = vadd.f32 %v159_v34, %v1068_v13 }
 0x131   :  { %892 = vtanh.f32 %v161_v35 }
 0x134   :  { %v887_v37 = vpop.eup %886 }
 0x135   :  { %v349_v38 = vrot.slane %v887_v37, %v348_v36  ;;  %v367_v39 = vmul.f32 %v887_v37, %v1076_v20 }
 0x136   :  { %v889_v40 = vpop.eup %888 }
 0x137   :  { %357 = vperm.xlu1 %825, %v349_v38   ;;  %v365_v42 = vmul.f32 %v889_v40, %v1078_v21  ;;  %v371_v43 = vrot.slane %v367_v39, 7  ;;  %v164_v44 = vmul.f32 %v889_v40, %v1063_v8 }
 0x139   :  { %v891_v46 = vpop.eup %890  ;;  %v375_v47 = vadd.f32 %v371_v43, %v365_v42  ;;  %v168_v48 = vrot.slane %v164_v44, 7 }
 0x13a   :  { %v353_v49 = vrot.slane %v891_v46, %v348_v36  ;;  %v368_v50 = vmul.f32 %v891_v46, %v1076_v20 }
 0x13b   :  { %v893_v51 = vpop.eup %892  ;;  %v377_v52 = vadd.f32 %v375_v47, %v1083_v26  ;;  %v172_v53 = vadd.f32 %v168_v48, %v1066_v12  ;;  %v456_v48 = vsub.s32 7, %v1093_v41 }
 0x13c   :  { %360 = vperm.xlu1 %825, %v353_v49   ;;  %v366_v54 = vmul.f32 %v893_v51, %v1078_v21  ;;  %v372_v55 = vrot.slane %v368_v50, 7  ;;  %v165_v56 = vmul.f32 %v893_v51, %v1063_v8 }
 0x13d   :  { %894 = vtanh.f32 %v377_v52  ;;  %v174_v57 = vadd.f32 %v172_v53, %v1068_v13 }
 0x13e   :  { %v376_v58 = vadd.f32 %v372_v55, %v366_v54  ;;  %v169_v59 = vrot.slane %v165_v56, 7 }
 0x13f   :  { %896 = vtanh.f32 %v174_v57 }
 0x140   :  { %v378_v60 = vadd.f32 %v376_v58, %v1083_v26  ;;  %v173_v61 = vadd.f32 %v169_v59, %v1072_v17 }
 0x142   :  { %898 = vtanh.f32 %v378_v60  ;;  %v175_v62 = vadd.f32 %v173_v61, %v1068_v13 }
 0x144   :  { %900 = vtanh.f32 %v175_v62 }
 0x147   :  { %v895_v0 = vpop.eup %894 }
 0x148   :  { %v385_v2 = vrot.slane %v895_v0, %v384_v63  ;;  %v403_v3 = vmul.f32 %v895_v0, %v1076_v20 }
 0x149   :  { %v897_v4 = vpop.eup %896 }
 0x14a   :  { %393 = vperm.xlu1 %825, %v385_v2   ;;  %v401_v5 = vmul.f32 %v897_v4, %v1078_v21  ;;  %v407_v6 = vrot.slane %v403_v3, 7  ;;  %v178_v9 = vmul.f32 %v897_v4, %v1063_v8 }
 0x14c   :  { %v899_v10 = vpop.eup %898  ;;  %v411_v11 = vadd.f32 %v407_v6, %v401_v5  ;;  %v182_v14 = vrot.slane %v178_v9, 7 }
 0x14d   :  { %v389_v15 = vrot.slane %v899_v10, %v384_v63  ;;  %v404_v16 = vmul.f32 %v899_v10, %v1076_v20 }
 0x14e   :  { %v901_v18 = vpop.eup %900  ;;  %v413_v19 = vadd.f32 %v411_v11, %v1083_v26  ;;  %v186_v22 = vadd.f32 %v182_v14, %v1066_v12  ;;  %v420_v12 = vsub.s32 6, %v1093_v41 }
 0x14f   :  { %396 = vperm.xlu1 %825, %v389_v15   ;;  %v402_v23 = vmul.f32 %v901_v18, %v1078_v21  ;;  %v408_v24 = vrot.slane %v404_v16, 7  ;;  %v179_v25 = vmul.f32 %v901_v18, %v1063_v8 }
 0x150   :  { %902 = vtanh.f32 %v413_v19  ;;  %v188_v27 = vadd.f32 %v186_v22, %v1068_v13  ;;  %v1007_v19 = vmov 3   ;;  %v1008_v22 = vmov 2  }
 0x151   :  { %v412_v28 = vadd.f32 %v408_v24, %v402_v23  ;;  %v183_v29 = vrot.slane %v179_v25, 7  ;;  %v1009_v23 = vmov 4   ;;  %v1010_v24 = vmov 5  }
 0x152   :  { %904 = vtanh.f32 %v188_v27  ;;  %v1012_v25 = vmov 7   ;;  %v784_v27 = vld [vmem:[#allocation6 + $0x1] ss:$0 sm:$0xff] }
 0x153   :  { %v414_v30 = vadd.f32 %v412_v28, %v1083_v26  ;;  %v187_v31 = vadd.f32 %v183_v29, %v1072_v17  ;;  %v786_v28 = vld [vmem:[#allocation6 + $0x2] ss:$0 sm:$0xff] }
 0x155   :  { %906 = vtanh.f32 %v414_v30  ;;  %v189_v32 = vadd.f32 %v187_v31, %v1068_v13  ;;  %v785_v30 = vld [vmem:[#allocation6 + $0x11] ss:$0 sm:$0xff] }
 0x157   :  { %908 = vtanh.f32 %v189_v32 }
 0x15a   :  { %v903_v33 = vpop.eup %902 }
 0x15b   :  { %v421_v34 = vrot.slane %v903_v33, %v420_v12  ;;  %v439_v8 = vmul.f32 %v903_v33, %v1076_v20 }
 0x15c   :  { %v905_v35 = vpop.eup %904 }
 0x15d   :  { %429 = vperm.xlu1 %825, %v421_v34   ;;  %v437_v36 = vmul.f32 %v905_v35, %v1078_v21  ;;  %v443_v37 = vrot.slane %v439_v8, 7  ;;  %v787_v34 = vld [vmem:[#allocation6 + $0x3] ss:$0 sm:$0xff]  ;;  %v788_v8 = vld [vmem:[#allocation6 + $0x4] ss:$0 sm:$0xff] }
 0x15f   :  { %v907_v38 = vpop.eup %906  ;;  %v447_v39 = vadd.f32 %v443_v37, %v437_v36 }
 0x160   :  { %v425_v40 = vrot.slane %v907_v38, %v420_v12  ;;  %v440_v17 = vmul.f32 %v907_v38, %v1076_v20  ;;  %v1006_v20 = vmov 1  }
 0x161   :  { %v909_v42 = vpop.eup %908  ;;  %v449_v13 = vadd.f32 %v447_v39, %v1083_v26 }
 0x162   :  { %432 = vperm.xlu1 %825, %v425_v40   ;;  %v438_v43 = vmul.f32 %v909_v42, %v1078_v21  ;;  %v444_v44 = vrot.slane %v440_v17, 7  ;;  %v789_v17 = vld [vmem:[#allocation6 + $0x5] ss:$0 sm:$0xff] }
 0x163   :  { %910 = vtanh.f32 %v449_v13 }
 0x164   :  { %v448_v46 = vadd.f32 %v444_v44, %v438_v43  ;;  %v790_v44 = vld [vmem:[#allocation6 + $0x6] ss:$0 sm:$0xff] }
 0x166   :  { %v450_v47 = vadd.f32 %v448_v46, %v1083_v26 }
 0x168   :  { %912 = vtanh.f32 %v450_v47 }
 0x16d   :  { %v911_v49 = vpop.eup %910 }
 0x16e   :  { %v457_v50 = vrot.slane %v911_v49, %v456_v48 }
 0x170   :  { %465 = vperm.xlu1 %825, %v457_v50  }
 0x172   :  { %v913_v51 = vpop.eup %912 }
 0x173   :  { %v461_v52 = vrot.slane %v913_v51, %v456_v48  ;;  %v791_v48 = vld [vmem:[#allocation6 + $0x7] ss:$0 sm:$0xff] }
 0x175   :  { %468 = vperm.xlu1 %825, %v461_v52  }
 0x179   :  { %827 = vset.pattern.permute.xlu1 %v1006_v20 }
 0x17d   :  { %v250_v53 = vpop.permute.xlu1 %249 }
 0x181   :  { %v253_v21 = vpop.permute.xlu1 %252 }
 0x182   :  { %v254_v54 = vsel %vm217_vm1, %v253_v21, %v250_v53  ;;  %v792_v53 = vld [vmem:[#allocation6 + $0x8] ss:$0 sm:$0xff] }
 0x183   :  { %v256_v26 = vsel %vm237_vm3, %v254_v54, %v1109_v1 }
 0x190   :  { %v286_v41 = vpop.permute.xlu0 %285 }
 0x195   :  { %v289_v55 = vpop.permute.xlu1 %288 }
 0x196   :  { %v290_v56 = vsel %vm217_vm1, %v289_v55, %v286_v41 }
 0x197   :  { %v292_v57 = vsel %vm273_vm4, %v290_v56, %v256_v26  ;;  %v793_v56 = vld [vmem:[#allocation6 + $0x9] ss:$0 sm:$0xff] }
 0x1a3   :  { %v322_v58 = vpop.permute.xlu1 %321 }
 0x1a8   :  { %v325_v59 = vpop.permute.xlu1 %324 }
 0x1a9   :  { %v326_v60 = vsel %vm217_vm1, %v325_v59, %v322_v58  ;;  %v794_v59 = vld [vmem:[#allocation6 + $0x12] ss:$0 sm:$0xff] }
 0x1aa   :  { %v328_v61 = vsel %vm309_vm5, %v326_v60, %v292_v57  ;;  %v795_v57 = vld [vmem:[#allocation6 + $0xa] ss:$0 sm:$0xff] }
 0x1b6   :  { %v358_v62 = vpop.permute.xlu1 %357 }
 0x1bb   :  { %v361_v63 = vpop.permute.xlu1 %360 }
 0x1bc   :  { %v362_v1 = vsel %vm217_vm1, %v361_v63, %v358_v62 }
 0x1bd   :  { %v364_v0 = vsel %vm345_vm6, %v362_v1, %v328_v61  ;;  %v796_v1 = vld [vmem:[#allocation6 + $0xb] ss:$0 sm:$0xff] }
 0x1c9   :  { %v394_v2 = vpop.permute.xlu1 %393 }
 0x1ce   :  { %v397_v3 = vpop.permute.xlu1 %396 }
 0x1cf   :  { %v398_v4 = vsel %vm217_vm1, %v397_v3, %v394_v2 }
 0x1d0   :  { %v400_v5 = vsel %vm381_vm7, %v398_v4, %v364_v0  ;;  %v797_v4 = vld [vmem:[#allocation6 + $0xc] ss:$0 sm:$0xff] }
 0x1dc   :  { %v430_v6 = vpop.permute.xlu1 %429 }
 0x1e1   :  { %v433_v9 = vpop.permute.xlu1 %432 }
 0x1e2   :  { %v434_v10 = vsel %vm217_vm1, %v433_v9, %v430_v6  ;;  %v798_v6 = vld [vmem:[#allocation6 + $0xd] ss:$0 sm:$0xff] }
 0x1e3   :  { %v436_v11 = vsel %vm417_vm8, %v434_v10, %v400_v5 }
 0x1ef   :  { %v466_v14 = vpop.permute.xlu1 %465 }
 0x1f4   :  { %v469_v15 = vpop.permute.xlu1 %468 }
 0x1f5   :  { %v470_v16 = vsel %vm217_vm1, %v469_v15, %v466_v14  ;;  %v799_v14 = vld [vmem:[#allocation6 + $0xe] ss:$0 sm:$0xff]  ;;  %v800_v15 = vld [vmem:[#allocation6 + $0xf] ss:$0 sm:$0xff] }
 0x1f6   :  { %v472_v18 = vsel %vm453_vm9, %v470_v16, %v436_v11 }
 0x1f7   :  { %492 = vperm.xlu1 %827, %v472_v18   ;;  %477 = vperm.xlu0 %826, %v472_v18  }
 0x1fb   :  { %829 = vset.pattern.permute.xlu1 %v1007_v19  ;;  %828 = vset.pattern.permute.xlu0 %v1008_v22 }
 0x1fc   :  { %514 = vperm.xlu1 %829, %v472_v18   ;;  %503 = vperm.xlu0 %828, %v472_v18  }
 0x200   :  { %830 = vset.pattern.permute.xlu1 %v1009_v23  ;;  %831 = vset.pattern.permute.xlu0 %v1010_v24 }
 0x201   :  { %525 = vperm.xlu1 %830, %v472_v18   ;;  %536 = vperm.xlu0 %831, %v472_v18  }
 0x205   :  { %832 = vset.pattern.permute.xlu1 %v1011_v45  ;;  %834 = vset.pattern.permute.xlu0 %v1005_v7 }
 0x206   :  { %547 = vperm.xlu1 %832, %v472_v18  }
 0x20a   :  { %833 = vset.pattern.permute.xlu1 %v1012_v25 }
 0x20b   :  { %558 = vperm.xlu1 %833, %v472_v18  }
 0x20f   :  { %835 = vset.pattern.permute.xlu1 %v1006_v20 }
 0x276   :  { %v493_v29 = vpop.permute.xlu1 %492  ;;  %v478_v31 = vpop.permute.xlu0 %477 }
 0x277   :  { %v484_v32 = vmul.f32 %v784_v27, %v478_v31  ;;  %v499_v12 = vmul.f32 %v786_v28, %v493_v29  ;;  %v801_v31 = vld [vmem:[#allocation6 + $0x10] ss:$0 sm:$0xff] }
 0x279   :  { %v489_v33 = vadd.f32 %v785_v30, %v484_v32 }
 0x27b   :  { %v515_v35 = vpop.permute.xlu1 %514  ;;  %v500_v36 = vadd.f32 %v499_v12, %v489_v33  ;;  %v504_v37 = vpop.permute.xlu0 %503 }
 0x27c   :  { %v510_v38 = vmul.f32 %v787_v34, %v504_v37  ;;  %v521_v39 = vmul.f32 %v788_v8, %v515_v35  ;;  %v802_v35 = vld [vmem:[#allocation6 + $0x13] ss:$0 sm:$0xff] }
 0x27e   :  { %v511_v40 = vadd.f32 %v510_v38, %v500_v36  ;;  %v803_v36 = vld [vmem:[#allocation6 + $0x1b] ss:$0 sm:$0xff]  ;;  %v804_v38 = vld [vmem:[#allocation6 + $0x14] ss:$0 sm:$0xff] }
 0x280   :  { %v526_v42 = vpop.permute.xlu1 %525  ;;  %v522_v13 = vadd.f32 %v521_v39, %v511_v40  ;;  %v537_v46 = vpop.permute.xlu0 %536  ;;  %v805_v40 = vld [vmem:[#allocation6 + $0x15] ss:$0 sm:$0xff] }
 0x281   :  { %v532_v43 = vmul.f32 %v789_v17, %v526_v42  ;;  %v543_v49 = vmul.f32 %v790_v44, %v537_v46  ;;  %v807_v46 = vld [vmem:[#allocation6 + $0x17] ss:$0 sm:$0xff] }
 0x283   :  { %v533_v47 = vadd.f32 %v532_v43, %v522_v13  ;;  %v806_v13 = vld [vmem:[#allocation6 + $0x16] ss:$0 sm:$0xff] }
 0x285   :  { %v548_v50 = vpop.permute.xlu1 %547  ;;  %v544_v51 = vadd.f32 %v543_v49, %v533_v47 }
 0x286   :  { %v554_v52 = vmul.f32 %v791_v48, %v548_v50  ;;  %v808_v48 = vld [vmem:[#allocation6 + $0x18] ss:$0 sm:$0xff] }
 0x288   :  { %v555_v54 = vadd.f32 %v554_v52, %v544_v51 }
 0x28a   :  { %v559_v21 = vpop.permute.xlu1 %558 }
 0x28b   :  { %v565_v26 = vmul.f32 %v792_v53, %v559_v21  ;;  %v809_v53 = vld [vmem:[#allocation6 + $0x19] ss:$0 sm:$0xff]  ;;  %v810_v21 = vld [vmem:[#allocation6 + $0x1a] ss:$0 sm:$0xff] }
 0x28d   :  { %v566_v41 = vadd.f32 %v565_v26, %v555_v54 }
 0x28f   :  { %v567_v55 = vmax.f32 %v566_v41, 0.0 }
 0x291   :  { %587 = vperm.xlu1 %835, %v567_v55   ;;  %572 = vperm.xlu0 %834, %v567_v55  }
 0x295   :  { %836 = vset.pattern.permute.xlu1 %v1008_v22  ;;  %837 = vset.pattern.permute.xlu0 %v1007_v19 }
 0x296   :  { %598 = vperm.xlu1 %836, %v567_v55   ;;  %609 = vperm.xlu0 %837, %v567_v55  }
 0x29a   :  { %838 = vset.pattern.permute.xlu1 %v1009_v23  ;;  %840 = vset.pattern.permute.xlu0 %v1011_v45 }
 0x29b   :  { %620 = vperm.xlu1 %838, %v567_v55   ;;  %642 = vperm.xlu0 %840, %v567_v55  }
 0x29f   :  { %839 = vset.pattern.permute.xlu1 %v1010_v24  ;;  %843 = vset.pattern.permute.xlu0 %v1006_v20 }
 0x2a0   :  { %631 = vperm.xlu1 %839, %v567_v55  }
 0x2a4   :  { %841 = vset.pattern.permute.xlu1 %v1012_v25 }
 0x2a5   :  { %653 = vperm.xlu1 %841, %v567_v55  }
 0x2a9   :  { %842 = vset.pattern.permute.xlu1 %v1005_v7 }
 0x310   :  { %v588_v58 = vpop.permute.xlu1 %587  ;;  %v573_v60 = vpop.permute.xlu0 %572 }
 0x311   :  { %v579_v61 = vmul.f32 %v793_v56, %v573_v60  ;;  %v594_v62 = vmul.f32 %v795_v57, %v588_v58 }
 0x313   :  { %v584_v63 = vadd.f32 %v794_v59, %v579_v61 }
 0x315   :  { %v599_v0 = vpop.permute.xlu1 %598  ;;  %v595_v2 = vadd.f32 %v594_v62, %v584_v63  ;;  %v610_v20 = vpop.permute.xlu0 %609 }
 0x316   :  { %v605_v3 = vmul.f32 %v796_v1, %v599_v0  ;;  %v616_v9 = vmul.f32 %v797_v4, %v610_v20 }
 0x318   :  { %v606_v5 = vadd.f32 %v605_v3, %v595_v2 }
 0x31a   :  { %v621_v10 = vpop.permute.xlu1 %620  ;;  %v617_v11 = vadd.f32 %v616_v9, %v606_v5  ;;  %v643_v16 = vpop.permute.xlu0 %642 }
 0x31b   :  { %v627_v7 = vmul.f32 %v798_v6, %v621_v10  ;;  %v649_v29 = vmul.f32 %v800_v15, %v643_v16 }
 0x31d   :  { %v628_v27 = vadd.f32 %v627_v7, %v617_v11 }
 0x31f   :  { %v632_v18 = vpop.permute.xlu1 %631 }
 0x320   :  { %v638_v28 = vmul.f32 %v799_v14, %v632_v18 }
 0x322   :  { %v639_v30 = vadd.f32 %v638_v28, %v628_v27 }
 0x324   :  { %v654_v32 = vpop.permute.xlu1 %653  ;;  %v650_v12 = vadd.f32 %v649_v29, %v639_v30 }
 0x325   :  { %v660_v33 = vmul.f32 %v801_v31, %v654_v32 }
 0x327   :  { %v661_v34 = vadd.f32 %v660_v33, %v650_v12 }
 0x329   :  { %v662_v8 = vmax.f32 %v661_v34, 0.0 }
 0x32b   :  { %682 = vperm.xlu0 %843, %v662_v8   ;;  %667 = vperm.xlu1 %842, %v662_v8  }
 0x32f   :  { %846 = vset.pattern.permute.xlu0 %v1009_v23  ;;  %844 = vset.pattern.permute.xlu1 %v1008_v22 }
 0x330   :  { %715 = vperm.xlu0 %846, %v662_v8   ;;  %693 = vperm.xlu1 %844, %v662_v8  }
 0x334   :  { %849 = vset.pattern.permute.xlu0 %v1012_v25  ;;  %845 = vset.pattern.permute.xlu1 %v1007_v19 }
 0x335   :  { %748 = vperm.xlu0 %849, %v662_v8   ;;  %704 = vperm.xlu1 %845, %v662_v8  }
 0x339   :  { %847 = vset.pattern.permute.xlu1 %v1010_v24 }
 0x33a   :  { %726 = vperm.xlu1 %847, %v662_v8  }
 0x33e   :  { %848 = vset.pattern.permute.xlu1 %v1011_v45 }
 0x33f   :  { %737 = vperm.xlu1 %848, %v662_v8  }
 0x3aa   :  { %v668_v37 = vpop.permute.xlu1 %667  ;;  %v683_v22 = vpop.permute.xlu0 %682 }
 0x3ab   :  { %v674_v23 = vmul.f32 %v802_v35, %v668_v37  ;;  %v689_v17 = vmul.f32 %v804_v38, %v683_v22 }
 0x3ad   :  { %v679_v39 = vadd.f32 %v803_v36, %v674_v23 }
 0x3af   :  { %v694_v25 = vpop.permute.xlu1 %693  ;;  %v690_v42 = vadd.f32 %v689_v17, %v679_v39  ;;  %v716_v47 = vpop.permute.xlu0 %715 }
 0x3b0   :  { %v700_v19 = vmul.f32 %v805_v40, %v694_v25  ;;  %v722_v49 = vmul.f32 %v807_v46, %v716_v47 }
 0x3b2   :  { %v701_v44 = vadd.f32 %v700_v19, %v690_v42 }
 0x3b4   :  { %v705_v43 = vpop.permute.xlu1 %704  ;;  %v749_v54 = vpop.permute.xlu0 %748 }
 0x3b5   :  { %v711_v24 = vmul.f32 %v806_v13, %v705_v43  ;;  %v755_v56 = vmul.f32 %v810_v21, %v749_v54 }
 0x3b7   :  { %v712_v45 = vadd.f32 %v711_v24, %v701_v44 }
 0x3b9   :  { %v727_v50 = vpop.permute.xlu1 %726  ;;  %v723_v51 = vadd.f32 %v722_v49, %v712_v45 }
 0x3ba   :  { %v733_v52 = vmul.f32 %v808_v48, %v727_v50 }
 0x3bc   :  { %v734_v41 = vadd.f32 %v733_v52, %v723_v51 }
 0x3be   :  { %v738_v26 = vpop.permute.xlu1 %737 }
 0x3bf   :  { %v744_v55 = vmul.f32 %v809_v53, %v738_v26 }
 0x3c1   :  { %v745_v57 = vadd.f32 %v744_v55, %v734_v41 }
 0x3c3   :  { %v756_v58 = vadd.f32 %v755_v56, %v745_v57 }
 0x3c5   :  { %758 = vst.msk [vmem:[#allocation9] sm:$0x3] %vm757_vm10, %v756_v58 }
 0x3c6   :  { %981 = shalt.err (!%p978_p11)
}
 0x3c7   :  { %s982_s28 = scalar_lea.hbm %s1240_s3, 32 }
 0x3c8   :  { %p983_p12 = scmp.ne.s32.totalorder %s1240_s3, %s982_s28  ;;  %p986_p13 = scmp.lt.u32.totalorder %s982_s28, %s1240_s3 }
 0x3ca   :  { %p988_p0 = pnand %p986_p13, %p983_p12 }
 0x3cc   :  { %991 = shalt.err (!%p988_p0)
}
 0x3cd   :  { %768 = dma.vmem_to_hbm [thread:$0]  %s766_s24, 32, %s1240_s3, [#allocation4]  }
 0x3ce   :  { %998 = dma.done.wait [#allocation4], 32  }
 0x3cf   :  { %999 = vsyncadd [#allocation4], 4294967264 }
 0x3d0   :  { %772 = vsyncpa [#allocation3], 1 }
 0x3d1   :  { %773 = vsyncpa [#allocation7], 1 }
 0x3d2   :  { %774 = vsyncpa [#allocation4], 1 }
 0x3d3   :  { %775 = vsyncpa [#allocation5], 1 }

</bundles_post_ra>
